<compile_context>
chip_gen: v7x
topology: tpu7x:2x2x1
jax: 0.10.0
libtpu: 0.0.40
codegen_flags: <defaults>
</compile_context>

<pallas_src>
import functools

import jax
import jax.numpy as jnp
from jax.experimental import pallas as pl
from jax.experimental.pallas import tpu as pltpu

LANES = 128
CHUNK_ROWS = 512                         # compute sub-slab: 512 x 128 f32 = 256 KiB
TARGET_STEP_BYTES = 8 * 1024 * 1024      # x-block + t-block bytes per grid step
VMEM_LIMIT_BYTES = 32 * 1024 * 1024      # 2 inputs x 2 buffers x 4 MiB + headroom


def _dice_kernel(x_ref, t_ref, out_ref, *, rows_total, tile_rows, chunk_rows):
    c = pl.program_id(0)               # core-split index       ("parallel")
    i = pl.program_id(1)               # tile index in a split  ("arbitrary")
    n_inner = pl.num_programs(1)

    # Zero this split's resident accumulator block on its first tile.
    @pl.when(i == 0)
    def _():
        out_ref[...] = jnp.zeros_like(out_ref)

    # Logical tile position.  May point past the last valid row (partial edge
    # tile) or be entirely out of range (clamped duplicate tile when n_tiles
    # does not split evenly) -> handled by the masked branch.
    start_row = (c * n_inner + i) * tile_rows

    n_full = tile_rows // chunk_rows
    rem = tile_rows - n_full * chunk_rows        # static, multiple of 8

    def _tile(masked):
        def chunk(off, height, inter, denom):
            x = x_ref[pl.ds(off, height), :].astype(jnp.float32)
            t = t_ref[pl.ds(off, height), :].astype(jnp.float32)
            # Single-EUP sigmoid (tanh form): no exp + divide on the VPU.
            s = 0.5 * jnp.tanh(0.5 * x) + 0.5
            if masked:
                row = jax.lax.broadcasted_iota(jnp.int32, (height, LANES), 0)
                valid = (start_row + off + row) < rows_total
                s = jnp.where(valid, s, 0.0)
                t = jnp.where(valid, t, 0.0)
            g = height // 8
            # (height,128) -> (8,128): pure VPU adds, each (8,128) slab = 1 vreg.
            inter = inter + (s * t).reshape(g, 8, LANES).sum(axis=0)
            denom = denom + (s + t).reshape(g, 8, LANES).sum(axis=0)
            return inter, denom

        inter = jnp.zeros((8, LANES), jnp.float32)
        denom = jnp.zeros((8, LANES), jnp.float32)
        if n_full > 0:
            def body(ci, carry):
                off = pl.multiple_of(ci * chunk_rows, chunk_rows)
                return chunk(off, chunk_rows, *carry)
            inter, denom = jax.lax.fori_loop(0, n_full, body, (inter, denom),
                                             unroll=True)
        if rem > 0:
            inter, denom = chunk(n_full * chunk_rows, rem, inter, denom)

        out_ref[0, 0] += inter
        out_ref[0, 1] += denom

    needs_mask = start_row + tile_rows > rows_total

    @pl.when(jnp.logical_not(needs_mask))
    def _():
        _tile(False)          # steady-state tiles: no iota / compare / select

    @pl.when(needs_mask)
    def _():
        _tile(True)           # only edge / duplicate tiles pay for the mask


def _auto_num_splits():
    # 2 TensorCores per chip only on v7x-class parts; v5e/v6e have 1.
    try:
        kind = jax.devices()[0].device_kind.lower()
    except Exception:
        return 1
    return 2 if ("v7" in kind or "7x" in kind) else 1


def dice_loss(inputs, targets, smooth=1.0, tile_rows=None, num_splits=None):
    """Pallas implementation of DiceLoss.forward (returns a scalar f32)."""
    x_flat = inputs.reshape(-1)
    t_flat = targets.reshape(-1)
    total = int(x_flat.shape[0])
    assert int(t_flat.shape[0]) == total

    def _finish(inter, denom):
        dice = (2.0 * inter + smooth) / (denom + smooth)
        return (1.0 - dice).astype(jnp.float32)

    rows_total = total // LANES
    # Tiny inputs (< 1024 elements): not worth a kernel launch; keeps every
    # in-kernel block a clean multiple of the (8,128) vreg tile.
    if rows_total < 8:
        s = jax.nn.sigmoid(x_flat.astype(jnp.float32))
        t = t_flat.astype(jnp.float32)
        return _finish(jnp.sum(s * t), jnp.sum(s) + jnp.sum(t))

    main = rows_total * LANES
    if main != total:
        # <128-element ragged tail reduced here (tiny) -> no padded data and no
        # reliance on sigmoid(pad) == 0.  (The prefix slice below still copies
        # for ragged totals; fully avoiding it would need manual unaligned DMA.)
        xt = x_flat[main:].astype(jnp.float32)
        tt = t_flat[main:].astype(jnp.float32)
        st = jax.nn.sigmoid(xt)
        tail_inter = jnp.sum(st * tt)
        tail_denom = jnp.sum(st) + jnp.sum(tt)
        x_flat = x_flat[:main]
        t_flat = t_flat[:main]
    else:
        tail_inter = jnp.float32(0.0)
        tail_denom = jnp.float32(0.0)

    x2 = x_flat.reshape(rows_total, LANES)
    t2 = t_flat.reshape(rows_total, LANES)

    # Tile size chosen by bytes so bf16 inputs get 2x the rows of f32.
    max_tile = (rows_total // 8) * 8
    if tile_rows is None:
        bytes_per_row = LANES * (x2.dtype.itemsize + t2.dtype.itemsize)
        auto = (TARGET_STEP_BYTES // bytes_per_row) // CHUNK_ROWS * CHUNK_ROWS
        tile_rows = max(CHUNK_ROWS, auto)
    else:
        assert tile_rows % 8 == 0 and tile_rows >= 8
    tile_rows = min(tile_rows, max_tile)
    chunk_rows = min(CHUNK_ROWS, tile_rows)

    n_tiles = pl.cdiv(rows_total, tile_rows)
    if num_splits is None:
        num_splits = _auto_num_splits()
    n_split = num_splits if n_tiles >= num_splits else 1
    n_inner = pl.cdiv(n_tiles, n_split)

    if n_split == 1:
        in_index_map = lambda c, i: (i, 0)
    else:
        # Clamp so the (at most one) spare iteration of the last split re-reads
        # the final tile; its contribution is masked to zero in the kernel.
        in_index_map = lambda c, i: (jnp.minimum(c * n_inner + i, n_tiles - 1), 0)

    kernel = functools.partial(_dice_kernel, rows_total=rows_total,
                               tile_rows=tile_rows, chunk_rows=chunk_rows)

    partials = pl.pallas_call(
        kernel,
        out_shape=jax.ShapeDtypeStruct((n_split, 2, 8, LANES), jnp.float32),
        grid_spec=pltpu.PrefetchScalarGridSpec(
            num_scalar_prefetch=0,
            grid=(n_split, n_inner),
            in_specs=[
                pl.BlockSpec((tile_rows, LANES), in_index_map),
                pl.BlockSpec((tile_rows, LANES), in_index_map),
            ],
            out_specs=pl.BlockSpec((1, 2, 8, LANES),
                                   lambda c, i: (c, 0, 0, 0)),
        ),
        compiler_params=pltpu.CompilerParams(
            dimension_semantics=("parallel", "arbitrary"),
            vmem_limit_bytes=VMEM_LIMIT_BYTES,
        ),
    )(x2, t2)

    # Tiny final combine (a few KB) + dice math in plain jnp.
    inter = jnp.sum(partials[:, 0]) + tail_inter
    denom = jnp.sum(partials[:, 1]) + tail_denom
    return _finish(inter, denom)


def _dice_loss_ref(inputs, targets, smooth=1.0):
    s = jax.nn.sigmoid(inputs.reshape(-1).astype(jnp.float32))
    t = targets.reshape(-1).astype(jnp.float32)
    inter = jnp.sum(s * t)
    dice = (2.0 * inter + smooth) / (jnp.sum(s) + jnp.sum(t) + smooth)
    return 1.0 - dice


if __name__ == "__main__":
    key = jax.random.PRNGKey(0)
    k1, k2, k3, k4, k5, k6, k7, k8 = jax.random.split(key, 8)

    # 1) Main case: N,C,H,W = 2,4,16,16, f32 logits / f32 {0,1} targets.
    inputs = jax.random.normal(k1, (2, 4, 16, 16), dtype=jnp.float32)
    targets = jax.random.bernoulli(k2, p=0.5, shape=(2, 4, 16, 16)).astype(jnp.float32)
    loss = jax.block_until_ready(dice_loss(inputs, targets, smooth=1.0))
    ref = jax.block_until_ready(_dice_loss_ref(inputs, targets, smooth=1.0))
    assert jnp.allclose(loss, ref, atol=1e-5, rtol=1e-5), (loss, ref)

    # 2) Ragged element count (not a multiple of 128) + native bf16 dtypes:
    #    exercises the jnp tail path + masked edge tile.
    inputs2 = jax.random.normal(k3, (3, 5, 7, 11), dtype=jnp.bfloat16)
    targets2 = jax.random.bernoulli(k4, p=0.3, shape=(3, 5, 7, 11)).astype(jnp.bfloat16)
    loss2 = jax.block_until_ready(dice_loss(inputs2, targets2, smooth=1.0))
    ref2 = jax.block_until_ready(_dice_loss_ref(inputs2, targets2, smooth=1.0))
    assert jnp.allclose(loss2, ref2, atol=1e-4, rtol=1e-4), (loss2, ref2)

    # 3) Multi-tile path with a forced 2-way split: exercises the clamped
    #    duplicate tile + partial edge tile (small tile_rows only for testing).
    inputs3 = jax.random.normal(k5, (2, 4, 25, 192), dtype=jnp.float32)
    targets3 = jax.random.bernoulli(k6, p=0.5, shape=(2, 4, 25, 192)).astype(jnp.float32)
    loss3 = jax.block_until_ready(
        dice_loss(inputs3, targets3, smooth=1.0, tile_rows=64, num_splits=2))
    ref3 = jax.block_until_ready(_dice_loss_ref(inputs3, targets3, smooth=1.0))
    assert jnp.allclose(loss3, ref3, atol=1e-4, rtol=1e-4), (loss3, ref3)

    # 4) Single big tile whose row count is not a multiple of the compute
    #    chunk: exercises the in-kernel remainder chunk.
    inputs4 = jax.random.normal(k7, (1, 8, 100, 128), dtype=jnp.float32)
    targets4 = jax.random.bernoulli(k8, p=0.5, shape=(1, 8, 100, 128)).astype(jnp.float32)
    loss4 = jax.block_until_ready(dice_loss(inputs4, targets4, smooth=1.0))
    ref4 = jax.block_until_ready(_dice_loss_ref(inputs4, targets4, smooth=1.0))
    assert jnp.allclose(loss4, ref4, atol=1e-5, rtol=1e-5), (loss4, ref4)

    print("KERNEL_OK")
</pallas_src>

<mosaic_0001>
module attributes {stable_mosaic.version = 11 : i64} {
  func.func @_dice_kernel(%arg0: i32, %arg1: i32, %arg2: memref<16x128xf32, #tpu.memory_space<vmem>>, %arg3: memref<16x128xf32, #tpu.memory_space<vmem>>, %arg4: memref<1x2x8x128xf32, #tpu.memory_space<vmem>>) attributes {dimension_semantics = [#tpu.dimension_semantics<parallel>, #tpu.dimension_semantics<arbitrary>], iteration_bounds = array<i64: 1, 1>, scalar_prefetch = 0 : i64, scratch_operands = 0 : i64, tpu.core_type = #tpu.core_type<tc>, window_params = [{transform_indices = @transform_0, window_bounds = array<i64: 16, 128>}, {transform_indices = @transform_1, window_bounds = array<i64: 16, 128>}, {transform_indices = @transform_2, window_bounds = array<i64: 1, 2, 8, 128>}]} {
    %c0_i32 = arith.constant 0 : i32
    %0 = arith.cmpi eq, %arg1, %c0_i32 : i32
    %1 = arith.extui %0 : i1 to i32
    %c0_i32_0 = arith.constant 0 : i32
    %2 = arith.cmpi ne, %1, %c0_i32_0 : i32
    scf.if %2 {
      %cst = arith.constant 0.000000e+00 : f32
      %13 = vector.broadcast %cst : f32 to vector<1x2x8x128xf32>
      %c0 = arith.constant 0 : index
      %c0_5 = arith.constant 0 : index
      %c0_6 = arith.constant 0 : index
      %c0_7 = arith.constant 0 : index
      %14 = vector.load %arg4[%c0, %c0_5, %c0_6, %c0_7] : memref<1x2x8x128xf32, #tpu.memory_space<vmem>>, vector<1x2x8x128xf32>
      tpu.vector_store %arg4[%c0, %c0_5, %c0_6, %c0_7], %13 {strides = array<i32>} : memref<1x2x8x128xf32, #tpu.memory_space<vmem>>, vector<1x2x8x128xf32>,
    } else {
    }
    %c1_i32 = arith.constant 1 : i32
    %3 = arith.muli %arg0, %c1_i32 : i32
    %4 = arith.addi %3, %arg1 : i32
    %c16_i32 = arith.constant 16 : i32
    %5 = arith.muli %4, %c16_i32 : i32
    %c16_i32_1 = arith.constant 16 : i32
    %6 = arith.addi %5, %c16_i32_1 : i32
    %c16_i32_2 = arith.constant 16 : i32
    %7 = arith.cmpi sgt, %6, %c16_i32_2 : i32
    %true = arith.constant true
    %8 = arith.xori %7, %true : i1
    %9 = arith.extui %8 : i1 to i32
    %c0_i32_3 = arith.constant 0 : i32
    %10 = arith.cmpi ne, %9, %c0_i32_3 : i32
    scf.if %10 {
      %cst = arith.constant 0.000000e+00 : f32
      %13 = vector.broadcast %cst : f32 to vector<8x128xf32>
      %cst_5 = arith.constant 0.000000e+00 : f32
      %14 = vector.broadcast %cst_5 : f32 to vector<8x128xf32>
      %c0_i32_6 = arith.constant 0 : i32
      %c16_i32_7 = arith.constant 16 : i32
      %15 = arith.muli %c0_i32_6, %c16_i32_7 : i32
      %16 = tpu.assume_multiple %15, 16 : i32
      %17 = arith.index_cast %16 : i32 to index
      %c0 = arith.constant 0 : index
      %18 = vector.load %arg2[%17, %c0] : memref<16x128xf32, #tpu.memory_space<vmem>>, vector<16x128xf32>
      %19 = arith.index_cast %16 : i32 to index
      %c0_8 = arith.constant 0 : index
      %20 = vector.load %arg3[%19, %c0_8] : memref<16x128xf32, #tpu.memory_space<vmem>>, vector<16x128xf32>
      %cst_9 = arith.constant 5.000000e-01 : f32
      %21 = vector.broadcast %cst_9 : f32 to vector<16x128xf32>
      %22 = arith.mulf %21, %18 : vector<16x128xf32>
      %23 = math.tanh %22 : vector<16x128xf32>
      %cst_10 = arith.constant 5.000000e-01 : f32
      %24 = vector.broadcast %cst_10 : f32 to vector<16x128xf32>
      %25 = arith.mulf %24, %23 : vector<16x128xf32>
      %cst_11 = arith.constant 5.000000e-01 : f32
      %26 = vector.broadcast %cst_11 : f32 to vector<16x128xf32>
      %27 = arith.addf %25, %26 : vector<16x128xf32>
      %28 = arith.mulf %27, %20 : vector<16x128xf32>
      %29 = vector.shape_cast %28 : vector<16x128xf32> to vector<2x8x128xf32>
      %cst_12 = arith.constant dense<0.000000e+00> : vector<8x128xf32>
      %30 = vector.multi_reduction <add>, %29, %cst_12 [0] : vector<2x8x128xf32> to vector<8x128xf32>
      %31 = arith.addf %13, %30 : vector<8x128xf32>
      %32 = arith.addf %27, %20 : vector<16x128xf32>
      %33 = vector.shape_cast %32 : vector<16x128xf32> to vector<2x8x128xf32>
      %cst_13 = arith.constant dense<0.000000e+00> : vector<8x128xf32>
      %34 = vector.multi_reduction <add>, %33, %cst_13 [0] : vector<2x8x128xf32> to vector<8x128xf32>
      %35 = arith.addf %14, %34 : vector<8x128xf32>
      %c1_i32_14 = arith.constant 1 : i32
      %c0_15 = arith.constant 0 : index
      %c0_16 = arith.constant 0 : index
      %c0_17 = arith.constant 0 : index
      %c0_18 = arith.constant 0 : index
      %36 = vector.load %arg4[%c0_15, %c0_16, %c0_17, %c0_18] : memref<1x2x8x128xf32, #tpu.memory_space<vmem>>, vector<1x1x8x128xf32>
      %37 = vector.shape_cast %36 : vector<1x1x8x128xf32> to vector<8x128xf32>
      %38 = arith.addf %37, %31 : vector<8x128xf32>
      %c0_19 = arith.constant 0 : index
      %c0_20 = arith.constant 0 : index
      %c0_21 = arith.constant 0 : index
      %c0_22 = arith.constant 0 : index
      %39 = vector.load %arg4[%c0_19, %c0_20, %c0_21, %c0_22] : memref<1x2x8x128xf32, #tpu.memory_space<vmem>>, vector<1x1x8x128xf32>
      %40 = vector.shape_cast %39 : vector<1x1x8x128xf32> to vector<8x128xf32>
      %41 = vector.shape_cast %38 : vector<8x128xf32> to vector<1x1x8x128xf32>
      tpu.vector_store %arg4[%c0_19, %c0_20, %c0_21, %c0_22], %41 {strides = array<i32>} : memref<1x2x8x128xf32, #tpu.memory_space<vmem>>, vector<1x1x8x128xf32>,
      %c0_23 = arith.constant 0 : index
      %c1 = arith.constant 1 : index
      %c0_24 = arith.constant 0 : index
      %c0_25 = arith.constant 0 : index
      %42 = vector.load %arg4[%c0_23, %c1, %c0_24, %c0_25] : memref<1x2x8x128xf32, #tpu.memory_space<vmem>>, vector<1x1x8x128xf32>
      %43 = vector.shape_cast %42 : vector<1x1x8x128xf32> to vector<8x128xf32>
      %44 = arith.addf %43, %35 : vector<8x128xf32>
      %c0_26 = arith.constant 0 : index
      %c1_27 = arith.constant 1 : index
      %c0_28 = arith.constant 0 : index
      %c0_29 = arith.constant 0 : index
      %45 = vector.load %arg4[%c0_26, %c1_27, %c0_28, %c0_29] : memref<1x2x8x128xf32, #tpu.memory_space<vmem>>, vector<1x1x8x128xf32>
      %46 = vector.shape_cast %45 : vector<1x1x8x128xf32> to vector<8x128xf32>
      %47 = vector.shape_cast %44 : vector<8x128xf32> to vector<1x1x8x128xf32>
      tpu.vector_store %arg4[%c0_26, %c1_27, %c0_28, %c0_29], %47 {strides = array<i32>} : memref<1x2x8x128xf32, #tpu.memory_space<vmem>>, vector<1x1x8x128xf32>,
    } else {
    }
    %11 = arith.extui %7 : i1 to i32
    %c0_i32_4 = arith.constant 0 : i32
    %12 = arith.cmpi ne, %11, %c0_i32_4 : i32
    scf.if %12 {
      %cst = arith.constant 0.000000e+00 : f32
      %13 = vector.broadcast %cst : f32 to vector<8x128xf32>
      %cst_5 = arith.constant 0.000000e+00 : f32
      %14 = vector.broadcast %cst_5 : f32 to vector<8x128xf32>
      %c0_i32_6 = arith.constant 0 : i32
      %c16_i32_7 = arith.constant 16 : i32
      %15 = arith.muli %c0_i32_6, %c16_i32_7 : i32
      %16 = tpu.assume_multiple %15, 16 : i32
      %17 = arith.index_cast %16 : i32 to index
      %c0 = arith.constant 0 : index
      %18 = vector.load %arg2[%17, %c0] : memref<16x128xf32, #tpu.memory_space<vmem>>, vector<16x128xf32>
      %19 = arith.index_cast %16 : i32 to index
      %c0_8 = arith.constant 0 : index
      %20 = vector.load %arg3[%19, %c0_8] : memref<16x128xf32, #tpu.memory_space<vmem>>, vector<16x128xf32>
      %cst_9 = arith.constant 5.000000e-01 : f32
      %21 = vector.broadcast %cst_9 : f32 to vector<16x128xf32>
      %22 = arith.mulf %21, %18 : vector<16x128xf32>
      %23 = math.tanh %22 : vector<16x128xf32>
      %cst_10 = arith.constant 5.000000e-01 : f32
      %24 = vector.broadcast %cst_10 : f32 to vector<16x128xf32>
      %25 = arith.mulf %24, %23 : vector<16x128xf32>
      %cst_11 = arith.constant 5.000000e-01 : f32
      %26 = vector.broadcast %cst_11 : f32 to vector<16x128xf32>
      %27 = arith.addf %25, %26 : vector<16x128xf32>
      %28 = tpu.iota {dimensions = array<i32: 0>} : vector<16x128xi32>
      %29 = arith.addi %5, %16 : i32
      %30 = vector.broadcast %29 : i32 to vector<16x128xi32>
      %31 = arith.addi %30, %28 : vector<16x128xi32>
      %c16_i32_12 = arith.constant 16 : i32
      %32 = vector.broadcast %c16_i32_12 : i32 to vector<16x128xi32>
      %33 = arith.cmpi slt, %31, %32 : vector<16x128xi32>
      %cst_13 = arith.constant 0.000000e+00 : f32
      %34 = vector.broadcast %cst_13 : f32 to vector<16x128xf32>
      %35 = arith.select %33, %27, %34 : vector<16x128xi1>, vector<16x128xf32>
      %cst_14 = arith.constant 0.000000e+00 : f32
      %36 = vector.broadcast %cst_14 : f32 to vector<16x128xf32>
      %37 = arith.select %33, %20, %36 : vector<16x128xi1>, vector<16x128xf32>
      %38 = arith.mulf %35, %37 : vector<16x128xf32>
      %39 = vector.shape_cast %38 : vector<16x128xf32> to vector<2x8x128xf32>
      %cst_15 = arith.constant dense<0.000000e+00> : vector<8x128xf32>
      %40 = vector.multi_reduction <add>, %39, %cst_15 [0] : vector<2x8x128xf32> to vector<8x128xf32>
      %41 = arith.addf %13, %40 : vector<8x128xf32>
      %42 = arith.addf %35, %37 : vector<16x128xf32>
      %43 = vector.shape_cast %42 : vector<16x128xf32> to vector<2x8x128xf32>
      %cst_16 = arith.constant dense<0.000000e+00> : vector<8x128xf32>
      %44 = vector.multi_reduction <add>, %43, %cst_16 [0] : vector<2x8x128xf32> to vector<8x128xf32>
      %45 = arith.addf %14, %44 : vector<8x128xf32>
      %c1_i32_17 = arith.constant 1 : i32
      %c0_18 = arith.constant 0 : index
      %c0_19 = arith.constant 0 : index
      %c0_20 = arith.constant 0 : index
      %c0_21 = arith.constant 0 : index
      %46 = vector.load %arg4[%c0_18, %c0_19, %c0_20, %c0_21] : memref<1x2x8x128xf32, #tpu.memory_space<vmem>>, vector<1x1x8x128xf32>
      %47 = vector.shape_cast %46 : vector<1x1x8x128xf32> to vector<8x128xf32>
      %48 = arith.addf %47, %41 : vector<8x128xf32>
      %c0_22 = arith.constant 0 : index
      %c0_23 = arith.constant 0 : index
      %c0_24 = arith.constant 0 : index
      %c0_25 = arith.constant 0 : index
      %49 = vector.load %arg4[%c0_22, %c0_23, %c0_24, %c0_25] : memref<1x2x8x128xf32, #tpu.memory_space<vmem>>, vector<1x1x8x128xf32>
      %50 = vector.shape_cast %49 : vector<1x1x8x128xf32> to vector<8x128xf32>
      %51 = vector.shape_cast %48 : vector<8x128xf32> to vector<1x1x8x128xf32>
      tpu.vector_store %arg4[%c0_22, %c0_23, %c0_24, %c0_25], %51 {strides = array<i32>} : memref<1x2x8x128xf32, #tpu.memory_space<vmem>>, vector<1x1x8x128xf32>,
      %c0_26 = arith.constant 0 : index
      %c1 = arith.constant 1 : index
      %c0_27 = arith.constant 0 : index
      %c0_28 = arith.constant 0 : index
      %52 = vector.load %arg4[%c0_26, %c1, %c0_27, %c0_28] : memref<1x2x8x128xf32, #tpu.memory_space<vmem>>, vector<1x1x8x128xf32>
      %53 = vector.shape_cast %52 : vector<1x1x8x128xf32> to vector<8x128xf32>
      %54 = arith.addf %53, %45 : vector<8x128xf32>
      %c0_29 = arith.constant 0 : index
      %c1_30 = arith.constant 1 : index
      %c0_31 = arith.constant 0 : index
      %c0_32 = arith.constant 0 : index
      %55 = vector.load %arg4[%c0_29, %c1_30, %c0_31, %c0_32] : memref<1x2x8x128xf32, #tpu.memory_space<vmem>>, vector<1x1x8x128xf32>
      %56 = vector.shape_cast %55 : vector<1x1x8x128xf32> to vector<8x128xf32>
      %57 = vector.shape_cast %54 : vector<8x128xf32> to vector<1x1x8x128xf32>
      tpu.vector_store %arg4[%c0_29, %c1_30, %c0_31, %c0_32], %57 {strides = array<i32>} : memref<1x2x8x128xf32, #tpu.memory_space<vmem>>, vector<1x1x8x128xf32>,
    } else {
    }
    return
  }
  func.func @transform_0(%arg0: i32, %arg1: i32) -> (i32, i32) {
    %c0_i32 = arith.constant 0 : i32
    %c0_i32_0 = arith.constant 0 : i32
    return %arg1, %c0_i32 : i32, i32
  }
  func.func @transform_1(%arg0: i32, %arg1: i32) -> (i32, i32) {
    %c0_i32 = arith.constant 0 : i32
    %c0_i32_0 = arith.constant 0 : i32
    return %arg1, %c0_i32 : i32, i32
  }
  func.func @transform_2(%arg0: i32, %arg1: i32) -> (i32, i32, i32, i32) {
    %c0_i32 = arith.constant 0 : i32
    %c0_i32_0 = arith.constant 0 : i32
    %c0_i32_1 = arith.constant 0 : i32
    %c0_i32_2 = arith.constant 0 : i32
    return %arg0, %c0_i32, %c0_i32_0, %c0_i32_1 : i32, i32, i32, i32
  }
}

</mosaic_0001>

<bundles_post_ra>
// kernel: tpu_custom_call.1
= control target key start
LH: loop header
LB: loop body
LE: loop exit
PB: predicated region body
PF: predicated region fallthrough
CT: control target
= control target key end

     0   :  { %7 = vsyncpa [#allocation3], 0  ;;  %s289_s0 = inlined_call_operand.hbm [shape: f32[16,128], index: 0, kind: input, shape index: {}]   ;;  %s290_s1 = inlined_call_operand.hbm [shape: f32[16,128], index: 1, kind: input, shape index: {}]   ;;  %s291_s2 = inlined_call_operand.hbm [shape: f32[1,2,8,128], index: 2, kind: output, shape index: {}]  }
   0x1   :  { %8 = vsyncpa [#allocation6], 0 }
   0x2   :  { %9 = vsyncpa [#allocation4], 0  ;;  %s224_s9 = smov [#allocation2]   ;;  %s152_s13 = scalar_lea.hbm %s289_s0, 256 }
   0x3   :  { %s15_s10 = sshll.u32 %s224_s9, 4  ;;  %p153_p0 = scmp.ne.s32.totalorder %s289_s0, %s152_s13  ;;  %s16_s10 = int_to_ptr.vmem [resolvable:$true] %s15_s10 }
   0x4   :  { %p156_p1 = scmp.lt.u32.totalorder %s152_s13, %s289_s0 }
   0x6   :  { %p158_p2 = pnand %p156_p1, %p153_p0 }
   0x8   :  { %161 = shalt.err (!%p158_p2)
}
   0x9   :  { %s162_s18 = scalar_lea.vmem %s16_s10, 256  ;;  %p167_p4 = scmp.lt.s32.totalorder %s16_s10, %s16_s10 }
   0xa   :  { %p163_p3 = scmp.ne.s32.totalorder %s16_s10, %s162_s18  ;;  %p168_p5 = scmp.lt.s32.totalorder %s162_s18, %s162_s18 }
   0xc   :  { %p169_p6 = por %p168_p5, %p167_p4 }
   0xe   :  { %p170_p7 = pnand %p169_p6, %p163_p3 }
  0x10   :  { %173 = shalt.err (!%p170_p7)
}
  0x11   :  { %s225_s19 = smov 128   ;;  %s226_s20 = smov 8  }
  0x12   :  { %21 = dma.hbm_to_vmem [thread:$0]  %s289_s0, 256, %s16_s10, [#allocation3], %s225_s19, %s225_s19, %s226_s20  }
  0x13   :  { %s227_s23 = smov [#allocation5]   ;;  %s174_s27 = scalar_lea.hbm %s290_s1, 256 }
  0x14   :  { %s27_s24 = sshll.u32 %s227_s23, 4  ;;  %p175_p8 = scmp.ne.s32.totalorder %s290_s1, %s174_s27  ;;  %s28_s24 = int_to_ptr.vmem [resolvable:$true] %s27_s24 }
  0x15   :  { %p178_p9 = scmp.lt.u32.totalorder %s174_s27, %s290_s1 }
  0x17   :  { %p180_p10 = pnand %p178_p9, %p175_p8 }
  0x19   :  { %183 = shalt.err (!%p180_p10)
}
  0x1a   :  { %s184_s4 = scalar_lea.vmem %s28_s24, 256  ;;  %p189_p12 = scmp.lt.s32.totalorder %s28_s24, %s28_s24 }
  0x1b   :  { %p185_p11 = scmp.ne.s32.totalorder %s28_s24, %s184_s4  ;;  %p190_p13 = scmp.lt.s32.totalorder %s184_s4, %s184_s4 }
  0x1d   :  { %p191_p0 = por %p190_p13, %p189_p12 }
  0x1f   :  { %p192_p1 = pnand %p191_p0, %p185_p11 }
  0x21   :  { %195 = shalt.err (!%p192_p1)
}
  0x22   :  { %33 = dma.hbm_to_vmem [thread:$0]  %s290_s1, 256, %s28_s24, [#allocation6], %s225_s19, %s225_s19, %s226_s20  }
  0x23   :  { %218 = dma.done.wait [#allocation3], 256  }
  0x24   :  { %219 = vsyncadd [#allocation3], 4294967040 }
  0x25   :  { %220 = dma.done.wait [#allocation6], 256  }
  0x26   :  { %221 = vsyncadd [#allocation6], 4294967040  ;;  %v54_v0 = vld [vmem:[#allocation2] sm:$0xff]  ;;  %v55_v1 = vld [vmem:[#allocation2 + $0x8] sm:$0xff]  ;;  %s228_s1 = smov [#allocation7]  }
  0x27   :  { %v58_v2 = vmul.f32 0.5, %v54_v0  ;;  %v59_v3 = vmul.f32 0.5, %v55_v1  ;;  %v56_v7 = vld [vmem:[#allocation5] sm:$0xff]  ;;  %v57_v9 = vld [vmem:[#allocation5 + $0x8] sm:$0xff]  ;;  %s129_s6 = sshll.u32 %s228_s1, 4  ;;  %s130_s6 = int_to_ptr.vmem [resolvable:$true] %s129_s6 }
  0x28   :  { %s196_s7 = scalar_lea.vmem %s130_s6, 256  ;;  %p201_p3 = scmp.lt.s32.totalorder %s130_s6, %s130_s6 }
  0x29   :  { %148 = vtanh.f32 %v58_v2  ;;  %p197_p2 = scmp.ne.s32.totalorder %s130_s6, %s196_s7  ;;  %p202_p4 = scmp.lt.s32.totalorder %s196_s7, %s196_s7 }
  0x2a   :  { %150 = vtanh.f32 %v59_v3 }
  0x2b   :  { %p203_p5 = por %p202_p4, %p201_p3 }
  0x2d   :  { %p204_p6 = pnand %p203_p5, %p197_p2 }
  0x33   :  { %v149_v4 = vpop.eup %148 }
  0x34   :  { %v151_v5 = vpop.eup %150  ;;  %v62_v6 = vmul.f32 0.5, %v149_v4 }
  0x35   :  { %v63_v8 = vmul.f32 0.5, %v151_v5 }
  0x36   :  { %v64_v10 = vadd.f32 0.5, %v62_v6 }
  0x37   :  { %v65_v11 = vadd.f32 0.5, %v63_v8 }
  0x38   :  { %v66_v12 = vmul.f32 %v64_v10, %v56_v7  ;;  %v70_v13 = vadd.f32 %v64_v10, %v56_v7 }
  0x39   :  { %v67_v14 = vmul.f32 %v65_v11, %v57_v9  ;;  %v71_v15 = vadd.f32 %v65_v11, %v57_v9 }
  0x3b   :  { %v68_v16 = vadd.f32 %v67_v14, %v66_v12  ;;  %v72_v17 = vadd.f32 %v71_v15, %v70_v13 }
  0x3d   :  { %76 = vst [vmem:[#allocation7] sm:$0xff] %v68_v16  ;;  %80 = vst [vmem:[#allocation7 + $0x8] sm:$0xff] %v72_v17 }
  0x3e   :  { %207 = shalt.err (!%p204_p6)
}
  0x3f   :  { %s208_s10 = scalar_lea.hbm %s291_s2, 256 }
  0x40   :  { %p209_p7 = scmp.ne.s32.totalorder %s291_s2, %s208_s10  ;;  %p212_p8 = scmp.lt.u32.totalorder %s208_s10, %s291_s2 }
  0x42   :  { %p214_p9 = pnand %p212_p8, %p209_p7 }
  0x44   :  { %217 = shalt.err (!%p214_p9)
}
  0x45   :  { %135 = dma.vmem_to_hbm [thread:$0]  %s130_s6, 256, %s291_s2, [#allocation4], %s225_s19, %s225_s19, %s226_s20  }
  0x46   :  { %222 = dma.done.wait [#allocation4], 256  }
  0x47   :  { %223 = vsyncadd [#allocation4], 4294967040 }
  0x48   :  { %139 = vsyncpa [#allocation3], 1 }
  0x49   :  { %140 = vsyncpa [#allocation6], 1 }
  0x4a   :  { %141 = vsyncpa [#allocation4], 1 }

</bundles_post_ra>
